<compile_context>
chip_gen: v7x
topology: tpu7x:2x2x1
jax: 0.10.0
libtpu: 0.0.40
codegen_flags: <defaults>
</compile_context>

<pallas_src>
import functools

import numpy as np
import jax
import jax.numpy as jnp
from jax.experimental import pallas as pl
from jax.experimental.pallas import tpu as pltpu

_SEQ = 7          # forced by Conv1d(in_channels=7)
_LANES = 128


# --------------------------------------------------------------------------- scalar-pack layout

def make_scalar_layout(n_T, n_lstm):
    """Name -> offset for the single SMEM scalar-parameter pack (only the live scalars)."""
    names = [f"enc{i}_ln2b" for i in range(n_T)]
    names += [f"dec{i}_ln3b" for i in range(n_T)]
    for i in range(n_lstm):
        for g in ("i", "f", "g", "o"):
            names += [f"lstm{i}_wih_{g}", f"lstm{i}_whh_{g}", f"lstm{i}_b_{g}"]
    off = {n: k for k, n in enumerate(names)}
    return off, max(len(names), 1)


# --------------------------------------------------------------------------- fused kernel

def fused_locator_kernel(*refs, off, n_T, n_lstm, B, S, T, T_pad):
    """Whole InnerLocatorNetwork forward, fused into one grid-less Pallas kernel."""
    f32 = jnp.float32
    if n_T == 0:
        x_ref, sp_ref, cw_ref, o_ref = refs
    else:
        sp_ref, cw_ref, o_ref = refs

    def sp(name):                                 # scalar parameter read (SMEM, static offset)
        return sp_ref[off[name]]

    # ---- transformer encoder + decoder ------------------------------------------------------
    # d_model == 1  =>  every post-norm LayerNorm returns exactly its bias, so each layer's
    # output is an input-independent constant and the attention / FFN work is dead for EVERY
    # config with num_layers_Transformer >= 1 (exact fold; verified vs. the unfolded reference).
    if n_T >= 1:
        dec = jnp.zeros((B, S), f32) + sp(f"dec{n_T - 1}_ln3b")   # == decoder norm3 bias
    else:
        # No transformer layers: encoder/decoder are identity, so LSTM(input) feeds the conv.
        # PyTorch shape game: LSTM sees (seq=B, batch=S, feature=1); recurrence runs over axis 0.
        h_seq = x_ref[...]                                        # (B, S)
        for li in range(n_lstm):
            p = f"lstm{li}_"
            # input projections hoisted out of the serial recurrence
            pre_i = h_seq * sp(p + "wih_i") + sp(p + "b_i")
            pre_f = h_seq * sp(p + "wih_f") + sp(p + "b_f")
            pre_o = h_seq * sp(p + "wih_o") + sp(p + "b_o")
            pre_g = h_seq * sp(p + "wih_g") + sp(p + "b_g")
            whh_ifo = jnp.concatenate(                            # (3, S), hoisted
                [jnp.zeros((1, S), f32) + sp(p + "whh_i"),
                 jnp.zeros((1, S), f32) + sp(p + "whh_f"),
                 jnp.zeros((1, S), f32) + sp(p + "whh_o")], axis=0)
            whh_g = sp(p + "whh_g")
            h = jnp.zeros((1, S), f32)
            c = jnp.zeros((1, S), f32)
            rows = []
            for t in range(B):        # static unroll: the recurrence is inherently serial
                gates = jax.nn.sigmoid(                           # ONE fused sigmoid for i, f, o
                    jnp.concatenate([pre_i[t:t + 1], pre_f[t:t + 1], pre_o[t:t + 1]], axis=0)
                    + h * whh_ifo)
                gg = jnp.tanh(pre_g[t:t + 1] + h * whh_g)
                c = gates[1:2] * c + gates[0:1] * gg
                h = gates[2:3] * jnp.tanh(c)
                rows.append(h)
            h_seq = jnp.concatenate(rows, axis=0)                 # final (h, c) discarded
        dec = h_seq                                               # (B, S)

    # ---- Conv1d(in_channels=S=7, out=4, k=3, pad=1) over the L = B axis ---------------------
    # ONE (B+2, S) x (S, 3*128) matmul; tap contributions are 128-aligned lane slices.
    zrow = jnp.zeros((1, S), f32)
    dec_pad = jnp.concatenate([zrow, dec, zrow], axis=0)          # (B + 2, S)
    P = jnp.dot(dec_pad, cw_ref[0:S, :], preferred_element_type=f32)       # (B + 2, 3*128)
    out = (P[0:B, 0:_LANES]
           + P[1:B + 1, _LANES:2 * _LANES]
           + P[2:B + 2, 2 * _LANES:3 * _LANES]
           + cw_ref[S:S + 1, 0:_LANES])                           # (B, 128); lanes 4.. are zero

    # ---- slice / zero-pad to output_target_num rows; ONE dense (T_pad, 128) store -----------
    take = min(B, T)
    res = out[:take, :]
    if T_pad > take:
        res = jnp.concatenate([res, jnp.zeros((T_pad - take, _LANES), f32)], axis=0)
    o_ref[...] = res


# --------------------------------------------------------------------------- parameters

def init_raw_params(seed, cfg):
    """Raw, un-packed parameters (numpy) shared by the kernel pack and the pure-JAX reference."""
    rng = np.random.default_rng(seed)
    F = cfg["hidden_dim_Transformer"]
    V = cfg["initial_vocab_size"]
    D = cfg["vocab_embedding_dim"]
    nT = cfg["num_layers_Transformer"]
    nL = cfg["num_layers_LSTM"]
    assert cfg["feature_dim"] == 1 and D == 1 and cfg["hidden_dim_LSTM"] == 1
    assert cfg["num_heads_Transformer"] == 1

    def sc(s=0.3):
        return np.float32(rng.normal() * s)

    def vec(n, s=0.3):
        return (rng.normal(size=(n,)) * s).astype(np.float32)

    def attn():
        return dict(wq=sc(), wk=sc(), wv=sc(), wo=sc(),
                    bq=sc(0.05), bk=sc(0.05), bv=sc(0.05), bo=sc(0.05))

    raw = dict(embed=(rng.normal(size=(V, D)) * 0.5).astype(np.float32),
               enc=[], dec=[], lstm=[],
               conv_w=(rng.normal(size=(4, _SEQ, 3)) * 0.3).astype(np.float32),
               conv_b=vec(4, 0.05))
    for _ in range(nT):
        raw["enc"].append(dict(
            **attn(),
            ln1w=np.float32(1 + rng.normal() * 0.05), ln1b=sc(0.05),
            ln2w=np.float32(1 + rng.normal() * 0.05), ln2b=sc(0.05),
            w1=vec(F), b1=vec(F, 0.05), w2=vec(F), b2=sc(0.05)))
    for _ in range(nT):
        raw["dec"].append(dict(
            sa=attn(), ca=attn(),
            ln1w=np.float32(1 + rng.normal() * 0.05), ln1b=sc(0.05),
            ln2w=np.float32(1 + rng.normal() * 0.05), ln2b=sc(0.05),
            ln3w=np.float32(1 + rng.normal() * 0.05), ln3b=sc(0.05),
            w1=vec(F), b1=vec(F, 0.05), w2=vec(F), b2=sc(0.05)))
    for _ in range(nL):
        raw["lstm"].append(dict(wih=vec(4), whh=vec(4), bih=vec(4, 0.05), bhh=vec(4, 0.05)))
    return raw


def pack_params(raw, cfg):
    """Pack the live parameters into ONE SMEM scalar vector + ONE VMEM conv blob."""
    nT = cfg["num_layers_Transformer"]
    nL = cfg["num_layers_LSTM"]
    off, n = make_scalar_layout(nT, nL)
    sp = np.zeros((n,), np.float32)
    for i, p in enumerate(raw["enc"]):
        sp[off[f"enc{i}_ln2b"]] = p["ln2b"]
    for i, p in enumerate(raw["dec"]):
        sp[off[f"dec{i}_ln3b"]] = p["ln3b"]
    for i, p in enumerate(raw["lstm"]):
        for gi, g in enumerate(("i", "f", "g", "o")):                  # PyTorch gate order
            sp[off[f"lstm{i}_wih_{g}"]] = p["wih"][gi]
            sp[off[f"lstm{i}_whh_{g}"]] = p["whh"][gi]
            sp[off[f"lstm{i}_b_{g}"]] = p["bih"][gi] + p["bhh"][gi]    # b_ih + b_hh combined

    # conv pack (8, 384): row s, lanes [k*128, k*128+4) = conv_w[:, s, k]; row 7 lanes 0..3 = bias
    cw = np.zeros((_SEQ + 1, 3 * _LANES), np.float32)
    for k in range(3):
        cw[:_SEQ, k * _LANES:k * _LANES + 4] = raw["conv_w"][:, :, k].T
    cw[_SEQ, :4] = raw["conv_b"]
    return dict(sp=jnp.asarray(sp), conv_pack=jnp.asarray(cw), embed=jnp.asarray(raw["embed"]))


# --------------------------------------------------------------------------- forward (jitted glue + 1 kernel)

def make_forward(cfg):
    nT = cfg["num_layers_Transformer"]
    nL = cfg["num_layers_LSTM"]
    off, _ = make_scalar_layout(nT, nL)

    def forward(packed, input_data, output_name, *, output_target_num):
        B, S = input_data.shape
        assert S == _SEQ                                   # Conv1d(in_channels=7)
        T = output_target_num
        T_pad = ((T + 7) // 8) * 8                         # sublane-aligned dense output block

        kernel = functools.partial(fused_locator_kernel, off=off, n_T=nT, n_lstm=nL,
                                   B=B, S=S, T=T, T_pad=T_pad)

        ins, in_specs = [], []
        if nT == 0:
            # Input_Encoder glue (embedding lookup).  Only live when there are no transformer
            # layers; otherwise the input provably cannot influence the output (see header).
            # TODO(synk): Input_Encoder is undefined in the source repo; synthesized as an
            # nn.Embedding lookup; its padding mask (unused downstream) is dropped entirely.
            x0 = packed["embed"][input_data][:, :, 0].astype(jnp.float32)   # (B, S)
            ins.append(x0)
            in_specs.append(pl.BlockSpec(memory_space=pltpu.MemorySpace.VMEM))
        ins += [packed["sp"], packed["conv_pack"]]
        in_specs += [pl.BlockSpec(memory_space=pltpu.MemorySpace.SMEM),
                     pl.BlockSpec(memory_space=pltpu.MemorySpace.VMEM)]

        out_pad = pl.pallas_call(
            kernel,
            out_shape=jax.ShapeDtypeStruct((T_pad, _LANES), jnp.float32),
            in_specs=in_specs,
            out_specs=pl.BlockSpec(memory_space=pltpu.MemorySpace.VMEM),
        )(*ins)
        out = out_pad[:T, :4]                              # lane-dense store, sliced in wrapper

        # name_list: embedding(output_name).squeeze(1); .tolist() stays host-side, outside jit.
        name_emb = packed["embed"][output_name][:, 0, :]
        return out, name_emb

    return jax.jit(forward, static_argnames=("output_target_num",))


# --------------------------------------------------------------------------- unfolded pure-JAX reference

def reference_forward(raw, input_data, output_target_num):
    """Faithful, UNFOLDED JAX re-implementation of the PyTorch forward (eval mode).  Used to
    prove that the in-kernel LayerNorm(1) constant fold is exact."""
    eps = 1e-5
    emb = jnp.asarray(raw["embed"])
    x = emb[input_data]                                    # (B, S, 1)
    x = jnp.transpose(x, (1, 0, 2))                        # permute(1, 0, 2) -> (S, B, 1)

    def ln(v, w, b):
        mu = jnp.mean(v, axis=-1, keepdims=True)
        var = jnp.mean((v - mu) ** 2, axis=-1, keepdims=True)
        return (v - mu) / jnp.sqrt(var + eps) * w + b

    def mha(q_in, kv_in, p):                               # E == 1, nhead == 1, scale == 1
        q = q_in[..., 0] * p["wq"] + p["bq"]
        k = kv_in[..., 0] * p["wk"] + p["bk"]
        v = kv_in[..., 0] * p["wv"] + p["bv"]
        attn = jax.nn.softmax(q[:, None, :] * k[None, :, :], axis=1)
        ctx = jnp.sum(attn * v[None, :, :], axis=1)
        return (ctx * p["wo"] + p["bo"])[..., None]

    def ffn(v, p):
        h = jnp.maximum(v * p["w1"] + p["b1"], 0.0)
        return (jnp.sum(h * p["w2"], axis=-1) + p["b2"])[..., None]

    for p in raw["enc"]:                                   # post-norm encoder layers
        x = ln(x + mha(x, x, p), p["ln1w"], p["ln1b"])
        x = ln(x + ffn(x, p), p["ln2w"], p["ln2b"])
    mem = jnp.transpose(x, (1, 0, 2))                      # (B, S, 1)

    h_seq = mem                                            # LSTM: seq axis = B, batch axis = S
    for lp in raw["lstm"]:
        wih, whh = lp["wih"], lp["whh"]
        b = lp["bih"] + lp["bhh"]
        Bn, Sn, _ = h_seq.shape
        h = jnp.zeros((Sn,))
        c = jnp.zeros((Sn,))
        outs = []
        for t in range(Bn):
            xt = h_seq[t, :, 0]
            gi = jax.nn.sigmoid(wih[0] * xt + whh[0] * h + b[0])
            gf = jax.nn.sigmoid(wih[1] * xt + whh[1] * h + b[1])
            gg = jnp.tanh(wih[2] * xt + whh[2] * h + b[2])
            go = jax.nn.sigmoid(wih[3] * xt + whh[3] * h + b[3])
            c = gf * c + gi * gg
            h = go * jnp.tanh(c)
            outs.append(h)
        h_seq = jnp.stack(outs)[..., None]                 # (B, S, 1)

    y = h_seq                                              # post-norm decoder layers
    for p in raw["dec"]:
        y = ln(y + mha(y, y, p["sa"]), p["ln1w"], p["ln1b"])
        y = ln(y + mha(y, mem, p["ca"]), p["ln2w"], p["ln2b"])
        y = ln(y + ffn(y, p), p["ln3w"], p["ln3b"])

    xin = y[..., 0].T                                      # permute(1,0,2).squeeze(2) -> (S, B)
    xpad = jnp.pad(xin, ((0, 0), (1, 1)))
    w, bc = jnp.asarray(raw["conv_w"]), jnp.asarray(raw["conv_b"])
    Bn = xin.shape[1]
    out = jnp.zeros((4, Bn)) + bc[:, None]
    for k in range(3):
        out = out + jnp.einsum("cs,sl->cl", w[:, :, k], xpad[:, k:k + Bn])
    out = out.T                                            # permute(1, 0) -> (B, 4)
    T = output_target_num
    if out.shape[0] >= T:
        return out[:T]
    return jnp.concatenate([out, jnp.zeros((T - out.shape[0], 4))], axis=0)


# --------------------------------------------------------------------------- main

if __name__ == "__main__":
    # ---- config 1: the given module config (transformer layers present -> folded const path)
    cfg1 = dict(initial_vocab_size=16, vocab_embedding_dim=1, feature_dim=1,
                num_layers_Transformer=2, num_heads_Transformer=1,
                hidden_dim_Transformer=32, hidden_dim_LSTM=1, num_layers_LSTM=2)
    B1, T1 = 4, 6                       # T1 > B1 exercises the zero-padding branch
    raw1 = init_raw_params(0, cfg1)
    packed1 = pack_params(raw1, cfg1)
    fwd1 = make_forward(cfg1)

    k_in, k_name, k_in2 = jax.random.split(jax.random.PRNGKey(0), 3)
    input_data1 = jax.random.randint(k_in, (B1, _SEQ), 0, cfg1["initial_vocab_size"])
    output_name = jax.random.randint(k_name, (3, 1), 0, cfg1["initial_vocab_size"])

    out1, name_emb = fwd1(packed1, input_data1, output_name, output_target_num=T1)
    out1 = jax.block_until_ready(out1)
    ref1 = reference_forward(raw1, input_data1, T1)
    np.testing.assert_allclose(np.asarray(out1), np.asarray(ref1), rtol=1e-5, atol=1e-5)

    # ---- config 2: num_layers_Transformer == 0 -> the fused-gate LSTM + conv path is live
    cfg2 = dict(cfg1, num_layers_Transformer=0)
    B2, T2 = 5, 3                       # T2 < B2 exercises the slicing branch
    raw2 = init_raw_params(1, cfg2)
    packed2 = pack_params(raw2, cfg2)
    fwd2 = make_forward(cfg2)
    input_data2 = jax.random.randint(k_in2, (B2, _SEQ), 0, cfg2["initial_vocab_size"])
    out2, _ = fwd2(packed2, input_data2, output_name, output_target_num=T2)
    out2 = jax.block_until_ready(out2)
    ref2 = reference_forward(raw2, input_data2, T2)
    np.testing.assert_allclose(np.asarray(out2), np.asarray(ref2), rtol=1e-3, atol=1e-3)

    name_list = name_emb.tolist()       # host conversion outside the jitted/timed path

    assert out1.shape == (T1, 4) and out1.dtype == jnp.float32
    assert out2.shape == (T2, 4)
    assert bool(jnp.all(jnp.isfinite(out1))) and bool(jnp.all(jnp.isfinite(out2)))
    assert len(name_list) == 3 and len(name_list[0]) == cfg1["vocab_embedding_dim"]
    print("KERNEL_OK")
</pallas_src>

<mosaic_0001>
module attributes {stable_mosaic.version = 11 : i64} {
  func.func @fused_locator_kernel(%arg0: memref<28xf32, #tpu.memory_space<smem>>, %arg1: memref<8x384xf32, #tpu.memory_space<vmem>>, %arg2: memref<8x128xf32, #tpu.memory_space<vmem>>) attributes {dimension_semantics = [], scalar_prefetch = 0 : i64, scratch_operands = 0 : i64, tpu.core_type = #tpu.core_type<tc>} {
    %cst = arith.constant 0.000000e+00 : f32
    %0 = vector.broadcast %cst : f32 to vector<4x7xf32>
    %c3 = arith.constant 3 : index
    %1 = memref.load %arg0[%c3] : memref<28xf32, #tpu.memory_space<smem>>
    %2 = vector.broadcast %1 : f32 to vector<4x7xf32>
    %3 = arith.addf %0, %2 : vector<4x7xf32>
    %cst_0 = arith.constant 0.000000e+00 : f32
    %4 = vector.broadcast %cst_0 : f32 to vector<1x7xf32>
    %5 = tpu.concatenate %4, %3, %4 in 0 : vector<1x7xf32>, vector<4x7xf32>, vector<1x7xf32> -> vector<6x7xf32>
    %c0 = arith.constant 0 : index
    %c0_1 = arith.constant 0 : index
    %6 = vector.load %arg1[%c0, %c0_1] : memref<8x384xf32, #tpu.memory_space<vmem>>, vector<7x384xf32>
    %cst_2 = arith.constant dense<0.000000e+00> : vector<6x384xf32>
    %7 = tpu.matmul %5, %6, %cst_2 {dimension_numbers = #tpu.dot_dimension_numbers<[1], [0], [0], [1], [0, 0, 1, 1], [], []>} : vector<6x7xf32>, vector<7x384xf32>, vector<6x384xf32> -> vector<6x384xf32>
    %8 = vector.extract_strided_slice %7 {offsets = [0, 0], sizes = [4, 128], strides = [1, 1]} : vector<6x384xf32> to vector<4x128xf32>
    %9 = vector.extract_strided_slice %7 {offsets = [1, 128], sizes = [4, 128], strides = [1, 1]} : vector<6x384xf32> to vector<4x128xf32>
    %10 = arith.addf %8, %9 : vector<4x128xf32>
    %11 = vector.extract_strided_slice %7 {offsets = [2, 256], sizes = [4, 128], strides = [1, 1]} : vector<6x384xf32> to vector<4x128xf32>
    %12 = arith.addf %10, %11 : vector<4x128xf32>
    %c7 = arith.constant 7 : index
    %c0_3 = arith.constant 0 : index
    %13 = vector.load %arg1[%c7, %c0_3] : memref<8x384xf32, #tpu.memory_space<vmem>>, vector<1x128xf32>
    %14 = vector.broadcast %13 : vector<1x128xf32> to vector<4x128xf32>
    %15 = arith.addf %12, %14 : vector<4x128xf32>
    %cst_4 = arith.constant 0.000000e+00 : f32
    %16 = vector.broadcast %cst_4 : f32 to vector<4x128xf32>
    %17 = tpu.concatenate %15, %16 in 0 : vector<4x128xf32>, vector<4x128xf32> -> vector<8x128xf32>
    %c0_5 = arith.constant 0 : index
    %c0_6 = arith.constant 0 : index
    %18 = vector.load %arg2[%c0_5, %c0_6] : memref<8x128xf32, #tpu.memory_space<vmem>>, vector<8x128xf32>
    tpu.vector_store %arg2[%c0_5, %c0_6], %17 {strides = array<i32>} : memref<8x128xf32, #tpu.memory_space<vmem>>, vector<8x128xf32>,
    return
  }
}

</mosaic_0001>

<bundles_post_ra>
// kernel: forward.1
= control target key start
LH: loop header
LB: loop body
LE: loop exit
PB: predicated region body
PF: predicated region fallthrough
CT: control target
= control target key end

     0   :  { %7 = vsyncpa [#allocation3], 0  ;;  %s273_s0 = inlined_call_operand.vmem [shape: f32[28], index: 0, kind: input, shape index: {}]   ;;  %s274_s1 = inlined_call_operand.vmem [shape: f32[8,384], index: 1, kind: input, shape index: {}]   ;;  %s275_s2 = inlined_call_operand.vmem [shape: f32[8,128], index: 2, kind: output, shape index: {}]  }
   0x1   :  { %s14_s11 = sshll.u32 %s273_s0, 4  ;;  %s15_s11 = int_to_ptr.vmem [resolvable:$true] %s14_s11 }
   0x2   :  { %s223_s12 = scalar_lea.vmem %s15_s11, 16  ;;  %p228_p1 = scmp.lt.s32.totalorder %s15_s11, %s15_s11 }
   0x3   :  { %p224_p0 = scmp.ne.s32.totalorder %s15_s11, %s223_s12  ;;  %p229_p2 = scmp.lt.s32.totalorder %s223_s12, %s223_s12 }
   0x5   :  { %p230_p3 = por %p229_p2, %p228_p1 }
   0x7   :  { %p231_p4 = pnand %p230_p3, %p224_p0 }
   0x9   :  { %234 = shalt.err (!%p231_p4)
}
   0xa   :  { %s237_s13 = smov [#allocation2]  }
   0xb   :  { %17 = dma.vmem_to_smem %s15_s11, 16, %s237_s13, [#allocation3]  }
   0xc   :  { %235 = dma.done.wait [#allocation3], 16  }
   0xd   :  { %236 = vsyncadd [#allocation3], 4294967280 }
   0xe   :  { %23 = sfence }
   0xf   :  { %v32_v0 = vld [vmem:[%s274_s1 + $0x8] sm:$0x7f]  ;;  %vm38_vm0 = vcmask 1046528   ;;  %v31_v1 = vld [vmem:[%s274_s1] sm:$0x7f]  ;;  %v238_v2 = vmov 0.0  }
  0x10   :  { %208 = vmatprep.subr.msk.mxu0 %vm38_vm0, %v32_v0  ;;  %112 = vmatprep.mubr.f32.mxu0 %v238_v2  ;;  %s207_s17 = sld [smem:[#allocation2 + $0x3]]  ;;  %v33_v3 = vld [vmem:[%s274_s1 + $0x10] sm:$0x7f]  ;;  %vm239_vm1 = vmmov 0   ;;  %vm27_vm2 = vcmask 1040384   ;;  %vm29_vm3 = vcmask 1044480  }
  0x11   :  { %209 = vmatpush1.msk.msra.mxu0 %vm38_vm0, %v31_v1  ;;  %215 = vmatprep.subr.mxu1 %v238_v2  ;;  %vm34_vm4 = vcmask 56320   ;;  %v197_v14 = vld [vmem:[%s274_s1 + $0x7] ss:$0 sm:$0xff]  ;;  %vm199_vm5 = vcmask 1043456  }
  0x12   :  { %216 = vmatpush3.msk.msra.mxu1 %vm38_vm0, %v33_v3  ;;  %217 = vmatprep.mubr.msk.f32.mxu1 %vm239_vm1, %v238_v2 }
  0x16   :  { %v25_v4 = vstv %s207_s17 }
  0x17   :  { %v28_v5 = vsel %vm27_vm2, 0.0, %v25_v4 }
  0x18   :  { %v30_v6 = vsel %vm29_vm3, %v28_v5, 0.0 }
  0x19   :  { %210 = vmatmul.mubr.msk.f32.vlgmr.msra.gmra.mrb[0].mxu0 %vm34_vm4, %v30_v6  ;;  %218 = vmatmul.mubr.msk.f32.vlgmr.msra.gmra.mrb[0].mxu1 %vm34_vm4, %v30_v6 }
  0xec   :  { %v114_v7 = vpop.f32.mrb[0].mxu0  ;;  %v185_v8 = vpop.f32.mrb[0].mxu1 }
  0xed   :  { %v116_v9 = vpop.f32.mrb[1].mxu0  ;;  %v219_v10 = vpop.f32.mrb[1].mxu1  ;;  %v194_v12 = vrot.slane %v185_v8, 2 }
  0xee   :  { %v190_v11 = vrot.slane %v116_v9, 1 }
  0xf0   :  { %v192_v13 = vadd.f32 %v190_v11, %v114_v7 }
  0xf2   :  { %v196_v15 = vadd.f32 %v194_v12, %v192_v13 }
  0xf4   :  { %v198_v16 = vadd.f32 %v197_v14, %v196_v15 }
  0xf6   :  { %v200_v17 = vsel %vm199_vm5, %v198_v16, 0.0 }
  0xf7   :  { %201 = vst [vmem:[%s275_s2] sm:$0xff] %v200_v17 }
  0xf8   :  { %206 = vsyncpa [#allocation3], 1 }

</bundles_post_ra>
